<compile_context>
chip_gen: v7x
topology: tpu7x:2x2x1
jax: 0.10.0
libtpu: 0.0.40
codegen_flags: <defaults>
</compile_context>

<pallas_src>
import functools

import jax
import jax.numpy as jnp
from jax import lax
from jax.experimental import pallas as pl
from jax.experimental.pallas import tpu as pltpu

_EPS = 1e-5


def _vmem_limit_bytes():
    """Raise the scoped VMEM limit where the chip allows it (v5e/v6e: ~96 MiB, v7x: ~48 MiB)."""
    try:
        cap = pltpu.get_tpu_info().vmem_capacity_bytes
    except Exception:
        return 32 * 1024 * 1024          # conservative fallback, safe on every generation
    return int(min(96 * 1024 * 1024, max(32 * 1024 * 1024, (cap * 3) // 4)))


def _pick_row_block(Ho, Wo, *, target_cols=1024):
    """Smallest divisor Rb of Ho with Rb*Wo >= target_cols (falls back to Ho)."""
    best = 1
    for d in range(1, Ho + 1):
        if Ho % d:
            continue
        best = d
        if d * Wo >= target_cols:
            break
    return best


def _pick_chunk(S, Cout, *, target_bytes=4 * 1024 * 1024):
    """Spatial chunk (divisor of S, multiple of 128 unless full) for the elementwise pass 2."""
    if Cout * S * 6 <= target_bytes:
        return S
    best = S
    for cs in range(128, S, 128):
        if S % cs == 0 and Cout * cs * 6 <= target_bytes:
            best = cs                     # keep the largest qualifying chunk
    return best


def _conv_stats_kernel(x_ref, w_ref, conv_ref, stats_ref, xpad_ref, rhs_ref, *,
                       H, W, Cin, Cout, Rb):
    """One image per grid step: 3x3 conv as row-blocked MXU matmuls + fused BN partial stats.

    x_ref:     (Cin, H*W)          float32, native NCHW (spatial flattened onto lanes)
    w_ref:     (Cout, 9*Cin)       compute dtype, column order (ky, kx, cin)
    conv_ref:  (Cout, Ho*Wo)       compute dtype conv output (NCHW-flattened)
    stats_ref: (Cout, 2)           float32 per-image per-channel [sum, sum of squares]
    xpad_ref:  (Cin, (H+4)*W)      VMEM scratch: image cast to compute dtype, 2 zero rows each side
    rhs_ref:   (2, 9*Cin, Rb*W)    VMEM scratch: 2-slot im2col slab for the row-block matmul
    """
    cdt = xpad_ref.dtype
    RbW = Rb * W

    # ---- build the H-padded, compute-dtype copy of the image once per image (VMEM only) ----
    xpad_ref[:, 0:2 * W] = jnp.zeros((Cin, 2 * W), cdt)
    xpad_ref[:, (H + 2) * W:(H + 4) * W] = jnp.zeros((Cin, 2 * W), cdt)
    for b in range(H // Rb):
        lo = b * RbW
        xpad_ref[:, 2 * W + lo:2 * W + lo + RbW] = x_ref[:, lo:lo + RbW].astype(cdt)

    # ---- static lane masks for the W halo (left / right neighbour taps), hoisted ----
    col = lax.broadcasted_iota(jnp.int32, (1, RbW), 1) % W
    keep_l = (col != 0).astype(cdt)        # kx=0 samples w-1: invalid at w == 0
    keep_r = (col != W - 1).astype(cdt)    # kx=2 samples w+1: invalid at w == W-1

    w = w_ref[...]                         # (Cout, 9*Cin), resident for all row blocks
    s_acc = jnp.zeros((Cout, 1), jnp.float32)
    ss_acc = jnp.zeros((Cout, 1), jnp.float32)

    n_blocks = H // Rb                     # stride == 1 -> Ho == H
    for b in range(n_blocks):              # static unroll: all slices/offsets are constants
        r0 = b * Rb
        slot = b & 1                       # 2-slot RHS scratch: lets tap builds of block b+1
        for ky in range(3):                # overlap with the matmul of block b
            for kx in range(3):
                # contiguous lane window of the padded image; contaminated edge columns masked
                start = (r0 + ky + 1) * W + (kx - 1)
                piece = xpad_ref[:, start:start + RbW]          # (Cin, Rb*W)
                if kx == 0:
                    piece = piece * keep_l
                elif kx == 2:
                    piece = piece * keep_r
                t = ky * 3 + kx
                rhs_ref[slot, t * Cin:(t + 1) * Cin, :] = piece

        # Conv hot path: one wide lane-dense MXU matmul per row block, f32 accumulation.
        out = jnp.dot(w, rhs_ref[slot], preferred_element_type=jnp.float32)  # (Cout, Rb*W)
        conv_ref[:, r0 * W:r0 * W + RbW] = out.astype(conv_ref.dtype)

        # Fused training-mode BatchNorm partials from the unrounded f32 results.
        # NOTE: single-pass sum / sum-of-squares in f32; fine for activation-scale data.
        s_acc = s_acc + jnp.sum(out, axis=1, keepdims=True)
        ss_acc = ss_acc + jnp.sum(out * out, axis=1, keepdims=True)

    stats_ref[:, 0:1] = s_acc
    stats_ref[:, 1:2] = ss_acc


def _bn_relu_kernel(conv_ref, ss_ref, o_ref):
    """Apply folded BatchNorm affine + ReLU on an NCHW-flattened chunk.

    conv_ref: (Cout, CS) compute dtype
    ss_ref:   (Cout, 2)  float32 [scale | shift]
    o_ref:    (Cout, CS) float32
    """
    ss = ss_ref[...]
    y = conv_ref[...].astype(jnp.float32) * ss[:, 0:1] + ss[:, 1:2]
    o_ref[...] = jnp.maximum(y, 0.0)


def conv_bn_relu(x, weight, bias, gamma, beta, *, stride=1, compute_dtype=jnp.bfloat16):
    """Forward of ConvBNRelu. x: (N, Cin, H, W) float32 -> (N, Cout, H, W) float32.

    `bias` is accepted for interface parity with nn.Conv2d but intentionally unused: a
    per-channel conv bias cancels exactly under training-mode BatchNorm (it only shifts the
    per-channel batch mean). This fusion is only valid with batch statistics (training mode).
    """
    del bias
    if stride != 1:
        # TODO(synk): stride>1 needs lane-strided tap gathers + Wo<W masked stores; not implemented.
        raise NotImplementedError("conv_bn_relu Pallas kernel currently supports stride=1 only")

    N, Cin, H, W = x.shape
    Cout, cin_w, kh, kw = weight.shape
    assert (kh, kw) == (3, 3) and cin_w == Cin
    Ho, Wo = H, W
    S = Ho * Wo
    Rb = _pick_row_block(Ho, Wo)

    # Free (row-major, metadata-only) reshape: native NCHW, no pad / transpose / cast copy in HBM.
    x_flat = x.reshape(N, Cin, H * W)
    # Weights -> (Cout, 9*Cin) with column order (ky, kx, cin) matching the in-kernel taps.
    w_mat = jnp.transpose(weight, (0, 2, 3, 1)).reshape(Cout, kh * kw * Cin).astype(compute_dtype)

    vmem_limit = _vmem_limit_bytes()

    # ---- pass 1: conv (row-blocked 9-tap matmuls) + per-image per-channel sum/sumsq ----
    conv_flat, stats = pl.pallas_call(
        functools.partial(_conv_stats_kernel, H=H, W=W, Cin=Cin, Cout=Cout, Rb=Rb),
        out_shape=(jax.ShapeDtypeStruct((N, Cout, S), compute_dtype),
                   jax.ShapeDtypeStruct((N, Cout, 2), jnp.float32)),
        grid=(N,),
        in_specs=[pl.BlockSpec((None, Cin, H * W), lambda n: (n, 0, 0)),
                  pl.BlockSpec((Cout, kh * kw * Cin), lambda n: (0, 0))],
        out_specs=(pl.BlockSpec((None, Cout, S), lambda n: (n, 0, 0)),
                   pl.BlockSpec((None, Cout, 2), lambda n: (n, 0, 0))),
        scratch_shapes=[pltpu.VMEM((Cin, (H + 4) * W), compute_dtype),
                        pltpu.VMEM((2, kh * kw * Cin, Rb * Wo), compute_dtype)],
        compiler_params=pltpu.CompilerParams(
            dimension_semantics=("parallel",),
            vmem_limit_bytes=vmem_limit),
    )(x_flat, w_mat)

    # ---- BatchNorm finalize: O(Cout) arithmetic only; exact under tiling / megacore ----
    count = float(N * Ho * Wo)
    tot = jnp.sum(stats, axis=0)                              # (Cout, 2) global sums
    mean = tot[:, 0] / count
    var = jnp.maximum(tot[:, 1] / count - mean * mean, 0.0)   # biased variance (training-mode BN)
    inv = lax.rsqrt(var + _EPS)
    scale = gamma.astype(jnp.float32) * inv
    shift = beta.astype(jnp.float32) - mean * scale
    scale_shift = jnp.stack([scale, shift], axis=1)           # (Cout, 2)

    # ---- pass 2: fused per-channel affine + ReLU, written directly in NCHW layout ----
    CS = _pick_chunk(S, Cout)
    y_flat = pl.pallas_call(
        _bn_relu_kernel,
        out_shape=jax.ShapeDtypeStruct((N, Cout, S), jnp.float32),
        grid=(N, S // CS),
        in_specs=[pl.BlockSpec((None, Cout, CS), lambda n, c: (n, 0, c)),
                  pl.BlockSpec((Cout, 2), lambda n, c: (0, 0))],
        out_specs=pl.BlockSpec((None, Cout, CS), lambda n, c: (n, 0, c)),
        compiler_params=pltpu.CompilerParams(
            dimension_semantics=("parallel", "parallel"),
            vmem_limit_bytes=vmem_limit),
    )(conv_flat, scale_shift)

    # Free reshape: (N, Cout, Ho*Wo) is already NCHW row-major.
    return y_flat.reshape(N, Cout, Ho, Wo)


def _reference(x, weight, bias, gamma, beta, *, conv_dtype=jnp.float32, store_dtype=None):
    """Pure-JAX reference for Conv2d(3x3, pad=1) + BatchNorm2d(training) + ReLU.

    `conv_dtype` rounds the conv inputs (f32 accumulation) and `store_dtype` optionally rounds
    the conv output before the affine, precision-matching the Pallas bf16 paths.
    """
    conv = lax.conv_general_dilated(
        x.astype(conv_dtype), weight.astype(conv_dtype),
        window_strides=(1, 1), padding=((1, 1), (1, 1)),
        dimension_numbers=("NCHW", "OIHW", "NCHW"),
        preferred_element_type=jnp.float32,
        precision=lax.Precision.HIGHEST,
    ) + bias.reshape(1, -1, 1, 1)
    mean = conv.mean(axis=(0, 2, 3), keepdims=True)
    var = ((conv - mean) ** 2).mean(axis=(0, 2, 3), keepdims=True)    # biased variance
    if store_dtype is not None:
        conv = conv.astype(store_dtype).astype(jnp.float32)
    y = (conv - mean) * lax.rsqrt(var + _EPS) * gamma.reshape(1, -1, 1, 1) + beta.reshape(1, -1, 1, 1)
    return jnp.maximum(y, 0.0)


if __name__ == "__main__":
    # Small shapes consistent with the module: channels_in=4, channels_out=8, stride=1.
    N, Cin, H, W = 2, 4, 16, 16
    Cout = 8

    key = jax.random.PRNGKey(0)
    k_x, k_w, k_b, k_g, k_bt = jax.random.split(key, 5)
    x = jax.random.normal(k_x, (N, Cin, H, W), dtype=jnp.float32)
    weight = 0.1 * jax.random.normal(k_w, (Cout, Cin, 3, 3), dtype=jnp.float32)
    bias = 0.1 * jax.random.normal(k_b, (Cout,), dtype=jnp.float32)
    gamma = 1.0 + 0.1 * jax.random.normal(k_g, (Cout,), dtype=jnp.float32)
    beta = 0.1 * jax.random.normal(k_bt, (Cout,), dtype=jnp.float32)

    # float32 path (f32 intermediate): checked tightly against a full-precision reference.
    fwd_f32 = jax.jit(functools.partial(conv_bn_relu, compute_dtype=jnp.float32))
    out_f32 = jax.block_until_ready(fwd_f32(x, weight, bias, gamma, beta))
    assert out_f32.shape == (N, Cout, H, W), out_f32.shape
    ref_f32 = _reference(x, weight, bias, gamma, beta, conv_dtype=jnp.float32)
    err_f32 = float(jnp.max(jnp.abs(out_f32 - ref_f32)))
    assert err_f32 < 1e-3, err_f32

    # Default bfloat16 path (bf16 MXU + bf16 intermediate, f32 accumulation / BN math):
    # checked against a precision-matched reference.
    fwd_bf16 = jax.jit(functools.partial(conv_bn_relu, compute_dtype=jnp.bfloat16))
    out_bf16 = jax.block_until_ready(fwd_bf16(x, weight, bias, gamma, beta))
    ref_bf16 = _reference(x, weight, bias, gamma, beta,
                          conv_dtype=jnp.bfloat16, store_dtype=jnp.bfloat16)
    err_bf16 = float(jnp.max(jnp.abs(out_bf16 - ref_bf16)))
    assert err_bf16 < 2e-2, err_bf16

    print("KERNEL_OK")
</pallas_src>

<mosaic_0001>
module attributes {stable_mosaic.version = 11 : i64} {
  func.func @_conv_stats_kernel(%arg0: i32, %arg1: memref<1x4x256xf32, #tpu.memory_space<vmem>>, %arg2: memref<8x36xf32, #tpu.memory_space<vmem>>, %arg3: memref<1x8x256xf32, #tpu.memory_space<vmem>>, %arg4: memref<1x8x2xf32, #tpu.memory_space<vmem>>, %arg5: memref<4x320xf32, #tpu.memory_space<vmem>>, %arg6: memref<2x36x256xf32, #tpu.memory_space<vmem>>) attributes {dimension_semantics = [#tpu.dimension_semantics<parallel>], iteration_bounds = array<i64: 2>, scalar_prefetch = 0 : i64, scratch_operands = 2 : i64, tpu.core_type = #tpu.core_type<tc>, window_params = [{transform_indices = @transform_0, window_bounds = array<i64: 1, 4, 256>}, {pipeline_mode = #tpu.pipeline_mode<synchronous>, transform_indices = @transform_1, window_bounds = array<i64: 8, 36>}, {transform_indices = @transform_2, window_bounds = array<i64: 1, 8, 256>}, {transform_indices = @transform_3, window_bounds = array<i64: 1, 8, 2>}]} {
    %cst = arith.constant 0.000000e+00 : f32
    %0 = vector.broadcast %cst : f32 to vector<4x32xf32>
    %c0 = arith.constant 0 : index
    %c0_0 = arith.constant 0 : index
    %1 = vector.load %arg5[%c0, %c0_0] : memref<4x320xf32, #tpu.memory_space<vmem>>, vector<4x32xf32>
    tpu.vector_store %arg5[%c0, %c0_0], %0 {strides = array<i32>} : memref<4x320xf32, #tpu.memory_space<vmem>>, vector<4x32xf32>,
    %cst_1 = arith.constant 0.000000e+00 : f32
    %2 = vector.broadcast %cst_1 : f32 to vector<4x32xf32>
    %c0_2 = arith.constant 0 : index
    %c288 = arith.constant 288 : index
    %3 = vector.load %arg5[%c0_2, %c288] : memref<4x320xf32, #tpu.memory_space<vmem>>, vector<4x32xf32>
    tpu.vector_store %arg5[%c0_2, %c288], %2 {strides = array<i32>} : memref<4x320xf32, #tpu.memory_space<vmem>>, vector<4x32xf32>,
    %c0_3 = arith.constant 0 : index
    %c0_4 = arith.constant 0 : index
    %c0_5 = arith.constant 0 : index
    %4 = vector.load %arg1[%c0_3, %c0_4, %c0_5] : memref<1x4x256xf32, #tpu.memory_space<vmem>>, vector<1x4x256xf32>
    %5 = vector.shape_cast %4 : vector<1x4x256xf32> to vector<4x256xf32>
    %c0_6 = arith.constant 0 : index
    %c32 = arith.constant 32 : index
    %6 = vector.load %arg5[%c0_6, %c32] : memref<4x320xf32, #tpu.memory_space<vmem>>, vector<4x256xf32>
    tpu.vector_store %arg5[%c0_6, %c32], %5 {strides = array<i32>} : memref<4x320xf32, #tpu.memory_space<vmem>>, vector<4x256xf32>,
    %7 = tpu.iota {dimensions = array<i32: 1>} : vector<1x256xi32>
    %c16_i32 = arith.constant 16 : i32
    %c0_i32 = arith.constant 0 : i32
    %8 = arith.cmpi eq, %c16_i32, %c0_i32 : i32
    %c1_i32 = arith.constant 1 : i32
    %9 = arith.select %8, %c1_i32, %c16_i32 : i32
    %10 = vector.broadcast %9 : i32 to vector<1x256xi32>
    %11 = arith.remsi %7, %10 : vector<1x256xi32>
    %c0_i32_7 = arith.constant 0 : i32
    %12 = vector.broadcast %c0_i32_7 : i32 to vector<1x256xi32>
    %13 = arith.cmpi ne, %11, %12 : vector<1x256xi32>
    %c0_i32_8 = arith.constant 0 : i32
    %14 = vector.broadcast %c0_i32_8 : i32 to vector<1x256xi32>
    %15 = arith.cmpi slt, %11, %14 : vector<1x256xi32>
    %c0_i32_9 = arith.constant 0 : i32
    %16 = arith.cmpi slt, %9, %c0_i32_9 : i32
    %17 = vector.broadcast %16 : i1 to vector<1x256xi1>
    %18 = vector.broadcast %17 : vector<1x256xi1> to vector<1x256xi1>
    %19 = arith.xori %15, %18 : vector<1x256xi1>
    %20 = arith.andi %19, %13 : vector<1x256xi1>
    %21 = vector.broadcast %9 : i32 to vector<1x256xi32>
    %22 = arith.addi %11, %21 : vector<1x256xi32>
    %23 = arith.select %20, %22, %11 : vector<1x256xi1>, vector<1x256xi32>
    %c0_i32_10 = arith.constant 0 : i32
    %24 = vector.broadcast %c0_i32_10 : i32 to vector<1x256xi32>
    %25 = arith.cmpi ne, %23, %24 : vector<1x256xi32>
    %26 = arith.extui %25 : vector<1x256xi1> to vector<1x256xi32>
    %27 = arith.sitofp %26 : vector<1x256xi32> to vector<1x256xf32>
    %c15_i32 = arith.constant 15 : i32
    %28 = vector.broadcast %c15_i32 : i32 to vector<1x256xi32>
    %29 = arith.cmpi ne, %23, %28 : vector<1x256xi32>
    %30 = arith.extui %29 : vector<1x256xi1> to vector<1x256xi32>
    %31 = arith.sitofp %30 : vector<1x256xi32> to vector<1x256xf32>
    %c0_11 = arith.constant 0 : index
    %c0_12 = arith.constant 0 : index
    %32 = vector.load %arg2[%c0_11, %c0_12] : memref<8x36xf32, #tpu.memory_space<vmem>>, vector<8x36xf32>
    %cst_13 = arith.constant 0.000000e+00 : f32
    %33 = vector.broadcast %cst_13 : f32 to vector<8x1xf32>
    %cst_14 = arith.constant 0.000000e+00 : f32
    %34 = vector.broadcast %cst_14 : f32 to vector<8x1xf32>
    %c0_15 = arith.constant 0 : index
    %c15 = arith.constant 15 : index
    %35 = vector.load %arg5[%c0_15, %c15] : memref<4x320xf32, #tpu.memory_space<vmem>>, vector<4x256xf32>
    %36 = vector.broadcast %27 : vector<1x256xf32> to vector<4x256xf32>
    %37 = arith.mulf %35, %36 : vector<4x256xf32>
    %c0_16 = arith.constant 0 : index
    %c0_17 = arith.constant 0 : index
    %c0_18 = arith.constant 0 : index
    %38 = vector.load %arg6[%c0_16, %c0_17, %c0_18] : memref<2x36x256xf32, #tpu.memory_space<vmem>>, vector<1x4x256xf32>
    %39 = vector.shape_cast %38 : vector<1x4x256xf32> to vector<4x256xf32>
    %40 = vector.shape_cast %37 : vector<4x256xf32> to vector<1x4x256xf32>
    tpu.vector_store %arg6[%c0_16, %c0_17, %c0_18], %40 {strides = array<i32>} : memref<2x36x256xf32, #tpu.memory_space<vmem>>, vector<1x4x256xf32>,
    %c0_19 = arith.constant 0 : index
    %c16 = arith.constant 16 : index
    %41 = vector.load %arg5[%c0_19, %c16] : memref<4x320xf32, #tpu.memory_space<vmem>>, vector<4x256xf32>
    %c0_20 = arith.constant 0 : index
    %c4 = arith.constant 4 : index
    %c0_21 = arith.constant 0 : index
    %42 = vector.load %arg6[%c0_20, %c4, %c0_21] : memref<2x36x256xf32, #tpu.memory_space<vmem>>, vector<1x4x256xf32>
    %43 = vector.shape_cast %42 : vector<1x4x256xf32> to vector<4x256xf32>
    %44 = vector.shape_cast %41 : vector<4x256xf32> to vector<1x4x256xf32>
    tpu.vector_store %arg6[%c0_20, %c4, %c0_21], %44 {strides = array<i32>} : memref<2x36x256xf32, #tpu.memory_space<vmem>>, vector<1x4x256xf32>,
    %c0_22 = arith.constant 0 : index
    %c17 = arith.constant 17 : index
    %45 = vector.load %arg5[%c0_22, %c17] : memref<4x320xf32, #tpu.memory_space<vmem>>, vector<4x256xf32>
    %46 = vector.broadcast %31 : vector<1x256xf32> to vector<4x256xf32>
    %47 = arith.mulf %45, %46 : vector<4x256xf32>
    %c0_23 = arith.constant 0 : index
    %c8 = arith.constant 8 : index
    %c0_24 = arith.constant 0 : index
    %48 = vector.load %arg6[%c0_23, %c8, %c0_24] : memref<2x36x256xf32, #tpu.memory_space<vmem>>, vector<1x4x256xf32>
    %49 = vector.shape_cast %48 : vector<1x4x256xf32> to vector<4x256xf32>
    %50 = vector.shape_cast %47 : vector<4x256xf32> to vector<1x4x256xf32>
    tpu.vector_store %arg6[%c0_23, %c8, %c0_24], %50 {strides = array<i32>} : memref<2x36x256xf32, #tpu.memory_space<vmem>>, vector<1x4x256xf32>,
    %c0_25 = arith.constant 0 : index
    %c31 = arith.constant 31 : index
    %51 = vector.load %arg5[%c0_25, %c31] : memref<4x320xf32, #tpu.memory_space<vmem>>, vector<4x256xf32>
    %52 = vector.broadcast %27 : vector<1x256xf32> to vector<4x256xf32>
    %53 = arith.mulf %51, %52 : vector<4x256xf32>
    %c0_26 = arith.constant 0 : index
    %c12 = arith.constant 12 : index
    %c0_27 = arith.constant 0 : index
    %54 = vector.load %arg6[%c0_26, %c12, %c0_27] : memref<2x36x256xf32, #tpu.memory_space<vmem>>, vector<1x4x256xf32>
    %55 = vector.shape_cast %54 : vector<1x4x256xf32> to vector<4x256xf32>
    %56 = vector.shape_cast %53 : vector<4x256xf32> to vector<1x4x256xf32>
    tpu.vector_store %arg6[%c0_26, %c12, %c0_27], %56 {strides = array<i32>} : memref<2x36x256xf32, #tpu.memory_space<vmem>>, vector<1x4x256xf32>,
    %c0_28 = arith.constant 0 : index
    %c32_29 = arith.constant 32 : index
    %57 = vector.load %arg5[%c0_28, %c32_29] : memref<4x320xf32, #tpu.memory_space<vmem>>, vector<4x256xf32>
    %c0_30 = arith.constant 0 : index
    %c16_31 = arith.constant 16 : index
    %c0_32 = arith.constant 0 : index
    %58 = vector.load %arg6[%c0_30, %c16_31, %c0_32] : memref<2x36x256xf32, #tpu.memory_space<vmem>>, vector<1x4x256xf32>
    %59 = vector.shape_cast %58 : vector<1x4x256xf32> to vector<4x256xf32>
    %60 = vector.shape_cast %57 : vector<4x256xf32> to vector<1x4x256xf32>
    tpu.vector_store %arg6[%c0_30, %c16_31, %c0_32], %60 {strides = array<i32>} : memref<2x36x256xf32, #tpu.memory_space<vmem>>, vector<1x4x256xf32>,
    %c0_33 = arith.constant 0 : index
    %c33 = arith.constant 33 : index
    %61 = vector.load %arg5[%c0_33, %c33] : memref<4x320xf32, #tpu.memory_space<vmem>>, vector<4x256xf32>
    %62 = vector.broadcast %31 : vector<1x256xf32> to vector<4x256xf32>
    %63 = arith.mulf %61, %62 : vector<4x256xf32>
    %c0_34 = arith.constant 0 : index
    %c20 = arith.constant 20 : index
    %c0_35 = arith.constant 0 : index
    %64 = vector.load %arg6[%c0_34, %c20, %c0_35] : memref<2x36x256xf32, #tpu.memory_space<vmem>>, vector<1x4x256xf32>
    %65 = vector.shape_cast %64 : vector<1x4x256xf32> to vector<4x256xf32>
    %66 = vector.shape_cast %63 : vector<4x256xf32> to vector<1x4x256xf32>
    tpu.vector_store %arg6[%c0_34, %c20, %c0_35], %66 {strides = array<i32>} : memref<2x36x256xf32, #tpu.memory_space<vmem>>, vector<1x4x256xf32>,
    %c0_36 = arith.constant 0 : index
    %c47 = arith.constant 47 : index
    %67 = vector.load %arg5[%c0_36, %c47] : memref<4x320xf32, #tpu.memory_space<vmem>>, vector<4x256xf32>
    %68 = vector.broadcast %27 : vector<1x256xf32> to vector<4x256xf32>
    %69 = arith.mulf %67, %68 : vector<4x256xf32>
    %c0_37 = arith.constant 0 : index
    %c24 = arith.constant 24 : index
    %c0_38 = arith.constant 0 : index
    %70 = vector.load %arg6[%c0_37, %c24, %c0_38] : memref<2x36x256xf32, #tpu.memory_space<vmem>>, vector<1x4x256xf32>
    %71 = vector.shape_cast %70 : vector<1x4x256xf32> to vector<4x256xf32>
    %72 = vector.shape_cast %69 : vector<4x256xf32> to vector<1x4x256xf32>
    tpu.vector_store %arg6[%c0_37, %c24, %c0_38], %72 {strides = array<i32>} : memref<2x36x256xf32, #tpu.memory_space<vmem>>, vector<1x4x256xf32>,
    %c0_39 = arith.constant 0 : index
    %c48 = arith.constant 48 : index
    %73 = vector.load %arg5[%c0_39, %c48] : memref<4x320xf32, #tpu.memory_space<vmem>>, vector<4x256xf32>
    %c0_40 = arith.constant 0 : index
    %c28 = arith.constant 28 : index
    %c0_41 = arith.constant 0 : index
    %74 = vector.load %arg6[%c0_40, %c28, %c0_41] : memref<2x36x256xf32, #tpu.memory_space<vmem>>, vector<1x4x256xf32>
    %75 = vector.shape_cast %74 : vector<1x4x256xf32> to vector<4x256xf32>
    %76 = vector.shape_cast %73 : vector<4x256xf32> to vector<1x4x256xf32>
    tpu.vector_store %arg6[%c0_40, %c28, %c0_41], %76 {strides = array<i32>} : memref<2x36x256xf32, #tpu.memory_space<vmem>>, vector<1x4x256xf32>,
    %c0_42 = arith.constant 0 : index
    %c49 = arith.constant 49 : index
    %77 = vector.load %arg5[%c0_42, %c49] : memref<4x320xf32, #tpu.memory_space<vmem>>, vector<4x256xf32>
    %78 = vector.broadcast %31 : vector<1x256xf32> to vector<4x256xf32>
    %79 = arith.mulf %77, %78 : vector<4x256xf32>
    %c0_43 = arith.constant 0 : index
    %c32_44 = arith.constant 32 : index
    %c0_45 = arith.constant 0 : index
    %80 = vector.load %arg6[%c0_43, %c32_44, %c0_45] : memref<2x36x256xf32, #tpu.memory_space<vmem>>, vector<1x4x256xf32>
    %81 = vector.shape_cast %80 : vector<1x4x256xf32> to vector<4x256xf32>
    %82 = vector.shape_cast %79 : vector<4x256xf32> to vector<1x4x256xf32>
    tpu.vector_store %arg6[%c0_43, %c32_44, %c0_45], %82 {strides = array<i32>} : memref<2x36x256xf32, #tpu.memory_space<vmem>>, vector<1x4x256xf32>,
    %c0_46 = arith.constant 0 : index
    %c0_47 = arith.constant 0 : index
    %c0_48 = arith.constant 0 : index
    %83 = vector.load %arg6[%c0_46, %c0_47, %c0_48] : memref<2x36x256xf32, #tpu.memory_space<vmem>>, vector<1x36x256xf32>
    %84 = vector.shape_cast %83 : vector<1x36x256xf32> to vector<36x256xf32>
    %cst_49 = arith.constant dense<0.000000e+00> : vector<8x256xf32>
    %85 = tpu.matmul %32, %84, %cst_49 {dimension_numbers = #tpu.dot_dimension_numbers<[1], [0], [0], [1], [0, 0, 1, 1], [], []>} : vector<8x36xf32>, vector<36x256xf32>, vector<8x256xf32> -> vector<8x256xf32>
    %c0_50 = arith.constant 0 : index
    %c0_51 = arith.constant 0 : index
    %c0_52 = arith.constant 0 : index
    %86 = vector.load %arg3[%c0_50, %c0_51, %c0_52] : memref<1x8x256xf32, #tpu.memory_space<vmem>>, vector<1x8x256xf32>
    %87 = vector.shape_cast %86 : vector<1x8x256xf32> to vector<8x256xf32>
    %88 = vector.shape_cast %85 : vector<8x256xf32> to vector<1x8x256xf32>
    tpu.vector_store %arg3[%c0_50, %c0_51, %c0_52], %88 {strides = array<i32>} : memref<1x8x256xf32, #tpu.memory_space<vmem>>, vector<1x8x256xf32>,
    %cst_53 = arith.constant dense<0.000000e+00> : vector<8xf32>
    %89 = vector.multi_reduction <add>, %85, %cst_53 [1] : vector<8x256xf32> to vector<8xf32>
    %90 = vector.shape_cast %89 : vector<8xf32> to vector<8x1xf32>
    %91 = arith.addf %33, %90 : vector<8x1xf32>
    %92 = arith.mulf %85, %85 : vector<8x256xf32>
    %cst_54 = arith.constant dense<0.000000e+00> : vector<8xf32>
    %93 = vector.multi_reduction <add>, %92, %cst_54 [1] : vector<8x256xf32> to vector<8xf32>
    %94 = vector.shape_cast %93 : vector<8xf32> to vector<8x1xf32>
    %95 = arith.addf %34, %94 : vector<8x1xf32>
    %c0_55 = arith.constant 0 : index
    %c0_56 = arith.constant 0 : index
    %c0_57 = arith.constant 0 : index
    %96 = vector.load %arg4[%c0_55, %c0_56, %c0_57] : memref<1x8x2xf32, #tpu.memory_space<vmem>>, vector<1x8x1xf32>
    %97 = vector.shape_cast %96 : vector<1x8x1xf32> to vector<8x1xf32>
    %98 = vector.shape_cast %91 : vector<8x1xf32> to vector<1x8x1xf32>
    tpu.vector_store %arg4[%c0_55, %c0_56, %c0_57], %98 {strides = array<i32>} : memref<1x8x2xf32, #tpu.memory_space<vmem>>, vector<1x8x1xf32>,
    %c0_58 = arith.constant 0 : index
    %c0_59 = arith.constant 0 : index
    %c1 = arith.constant 1 : index
    %99 = vector.load %arg4[%c0_58, %c0_59, %c1] : memref<1x8x2xf32, #tpu.memory_space<vmem>>, vector<1x8x1xf32>
    %100 = vector.shape_cast %99 : vector<1x8x1xf32> to vector<8x1xf32>
    %101 = vector.shape_cast %95 : vector<8x1xf32> to vector<1x8x1xf32>
    tpu.vector_store %arg4[%c0_58, %c0_59, %c1], %101 {strides = array<i32>} : memref<1x8x2xf32, #tpu.memory_space<vmem>>, vector<1x8x1xf32>,
    return
  }
  func.func @transform_0(%arg0: i32) -> (i32, i32, i32) {
    %c0_i32 = arith.constant 0 : i32
    %c0_i32_0 = arith.constant 0 : i32
    %c0_i32_1 = arith.constant 0 : i32
    return %arg0, %c0_i32, %c0_i32_0 : i32, i32, i32
  }
  func.func @transform_1(%arg0: i32) -> (i32, i32) {
    %c0_i32 = arith.constant 0 : i32
    %c0_i32_0 = arith.constant 0 : i32
    %c0_i32_1 = arith.constant 0 : i32
    return %c0_i32, %c0_i32_0 : i32, i32
  }
  func.func @transform_2(%arg0: i32) -> (i32, i32, i32) {
    %c0_i32 = arith.constant 0 : i32
    %c0_i32_0 = arith.constant 0 : i32
    %c0_i32_1 = arith.constant 0 : i32
    return %arg0, %c0_i32, %c0_i32_0 : i32, i32, i32
  }
  func.func @transform_3(%arg0: i32) -> (i32, i32, i32) {
    %c0_i32 = arith.constant 0 : i32
    %c0_i32_0 = arith.constant 0 : i32
    %c0_i32_1 = arith.constant 0 : i32
    return %arg0, %c0_i32, %c0_i32_0 : i32, i32, i32
  }
}

module attributes {stable_mosaic.version = 11 : i64} {
  func.func @_bn_relu_kernel(%arg0: i32, %arg1: i32, %arg2: memref<1x8x256xf32, #tpu.memory_space<vmem>>, %arg3: memref<8x2xf32, #tpu.memory_space<vmem>>, %arg4: memref<1x8x256xf32, #tpu.memory_space<vmem>>) attributes {dimension_semantics = [#tpu.dimension_semantics<parallel>, #tpu.dimension_semantics<parallel>], iteration_bounds = array<i64: 2, 1>, scalar_prefetch = 0 : i64, scratch_operands = 0 : i64, tpu.core_type = #tpu.core_type<tc>, window_params = [{transform_indices = @transform_0, window_bounds = array<i64: 1, 8, 256>}, {pipeline_mode = #tpu.pipeline_mode<synchronous>, transform_indices = @transform_1, window_bounds = array<i64: 8, 2>}, {transform_indices = @transform_2, window_bounds = array<i64: 1, 8, 256>}]} {
    %c0 = arith.constant 0 : index
    %c0_0 = arith.constant 0 : index
    %0 = vector.load %arg3[%c0, %c0_0] : memref<8x2xf32, #tpu.memory_space<vmem>>, vector<8x2xf32>
    %c0_1 = arith.constant 0 : index
    %c0_2 = arith.constant 0 : index
    %c0_3 = arith.constant 0 : index
    %1 = vector.load %arg2[%c0_1, %c0_2, %c0_3] : memref<1x8x256xf32, #tpu.memory_space<vmem>>, vector<1x8x256xf32>
    %2 = vector.shape_cast %1 : vector<1x8x256xf32> to vector<8x256xf32>
    %3 = vector.extract_strided_slice %0 {offsets = [0, 0], sizes = [8, 1], strides = [1, 1]} : vector<8x2xf32> to vector<8x1xf32>
    %4 = vector.broadcast %3 : vector<8x1xf32> to vector<8x256xf32>
    %5 = arith.mulf %2, %4 : vector<8x256xf32>
    %6 = vector.extract_strided_slice %0 {offsets = [0, 1], sizes = [8, 1], strides = [1, 1]} : vector<8x2xf32> to vector<8x1xf32>
    %7 = vector.broadcast %6 : vector<8x1xf32> to vector<8x256xf32>
    %8 = arith.addf %5, %7 : vector<8x256xf32>
    %cst = arith.constant 0.000000e+00 : f32
    %9 = vector.broadcast %cst : f32 to vector<8x256xf32>
    %10 = arith.maximumf %8, %9 : vector<8x256xf32>
    %c0_4 = arith.constant 0 : index
    %c0_5 = arith.constant 0 : index
    %c0_6 = arith.constant 0 : index
    %11 = vector.load %arg4[%c0_4, %c0_5, %c0_6] : memref<1x8x256xf32, #tpu.memory_space<vmem>>, vector<1x8x256xf32>
    %12 = vector.shape_cast %11 : vector<1x8x256xf32> to vector<8x256xf32>
    %13 = vector.shape_cast %10 : vector<8x256xf32> to vector<1x8x256xf32>
    tpu.vector_store %arg4[%c0_4, %c0_5, %c0_6], %13 {strides = array<i32>} : memref<1x8x256xf32, #tpu.memory_space<vmem>>, vector<1x8x256xf32>,
    return
  }
  func.func @transform_0(%arg0: i32, %arg1: i32) -> (i32, i32, i32) {
    %c0_i32 = arith.constant 0 : i32
    %c0_i32_0 = arith.constant 0 : i32
    return %arg0, %c0_i32, %arg1 : i32, i32, i32
  }
  func.func @transform_1(%arg0: i32, %arg1: i32) -> (i32, i32) {
    %c0_i32 = arith.constant 0 : i32
    %c0_i32_0 = arith.constant 0 : i32
    %c0_i32_1 = arith.constant 0 : i32
    return %c0_i32, %c0_i32_0 : i32, i32
  }
  func.func @transform_2(%arg0: i32, %arg1: i32) -> (i32, i32, i32) {
    %c0_i32 = arith.constant 0 : i32
    %c0_i32_0 = arith.constant 0 : i32
    return %arg0, %c0_i32, %arg1 : i32, i32, i32
  }
}

</mosaic_0001>

<bundles_post_ra>
// kernel: conv_bn_relu.3
= control target key start
LH: loop header
LB: loop body
LE: loop exit
PB: predicated region body
PF: predicated region fallthrough
CT: control target
= control target key end

     0   :  { %s372_s9 = smov 0   ;;  %s374_s10 = smov 0   ;;  %s408_s0 = inlined_call_operand.vmem [shape: f32[2,8,256], index: 0, kind: input, shape index: {}]   ;;  %s409_s1 = inlined_call_operand.vmem [shape: f32[8,2], index: 1, kind: input, shape index: {}]   ;;  %s410_s2 = inlined_call_operand.vmem [shape: f32[2,8,256], index: 2, kind: output, shape index: {}]  }
   0x1   :  { %s376_s11 = smov 0  }
   0x2 LB: > { %s24_s12 = sadd.s32 1, %s349_s10  ;;  %p294_p0 = scmp.ge.s32.totalorder %s353_s11, 1  ;;  %s353_s11 = sphi %s376_s11, %s12_s11   ;;  %s349_s10 = sphi %s374_s10, %s412_s10   ;;  %s345_s9 = sphi %s372_s9, %s411_s9  }
   0x3   : > { %p26_p1 = scmp.ge.s32.totalorder %s24_s12, 2  ;;  %p133_p2 = scmp.lt.s32.totalorder %s353_s11, 3 }
   0x5   : > { %s414_s12 = smov (%p26_p1, %s24_s12), 0  ;;  %p134_p3 = pnand %p294_p0, %p133_p2 }
   0x6   : > { %v183_v0 = vld [vmem:[%s409_s1] sm:$0xff] (!%p134_p3)  ;;  %v355_v1 = vmov (!%p134_p3), 0   ;;  %v356_v2 = vmov (!%p134_p3), 1   ;;  %p164_p4 = scmp.lt.s32.totalorder (!%p134_p3), %s345_s9, 1 }
   0x7   : > { %137 = sbr.rel (%p134_p3) target bundleno = 146 (0x92), region = 28  ;;  %329 = vset.pattern.permute.xlu0 (!%p134_p3), %v355_v1 }
   0x8   : > { %188 = vperm.xlu0 (!%p134_p3), %329, %v183_v0  }
   0xc   : > { %330 = vset.pattern.permute.xlu0 (!%p134_p3), %v356_v2 }
   0xd   : > { %194 = vperm.xlu0 (!%p134_p3), %330, %v183_v0  }
   0xe   : > { %s416_s9 = smov (!%p164_p4, %s345_s9), 1 }
   0xf   : > { %s301_s15 = sshll.u32 %s416_s9, 4 }
  0x10   : > { %s171_s18 = scalar_lea.vmem %s408_s0, %s301_s15  ;;  %s181_s21 = scalar_lea.vmem %s410_s2, %s301_s15 }
  0x11   : > { %v184_v4 = vld [vmem:[%s171_s18] sm:$0xff]  ;;  %v185_v5 = vld [vmem:[%s171_s18 + $0x8] sm:$0xff] }
  0x87   : > { %v189_v3 = vpop.permute.xlu0 %188 }
  0x88   : > { %v191_v6 = vmul.f32 %v189_v3, %v184_v4  ;;  %v192_v7 = vmul.f32 %v189_v3, %v185_v5 }
  0x8c   : > { %v195_v8 = vpop.permute.xlu0 %194 }
  0x8d   : > { %v197_v9 = vadd.f32 %v195_v8, %v191_v6  ;;  %v198_v10 = vadd.f32 %v195_v8, %v192_v7 }
  0x8f   : > { %v199_v11 = vmax.f32 %v197_v9, 0.0  ;;  %v200_v12 = vmax.f32 %v198_v10, 0.0 }
  0x91   : > { %201 = vst [vmem:[%s181_s21] sm:$0xff] %v199_v11  ;;  %202 = vst [vmem:[%s181_s21 + $0x8] sm:$0xff] %v200_v12 }
  0x92 PF: > { %s12_s11 = sadd.s32 1, %s353_s11   ;;  %s411_s9 = smov %s349_s10 }
  0x93   : > { %p9_p5 = scmp.ge.s32.totalorder %s12_s11, 4   ;;  %s412_s10 = smov %s414_s12 }
  0x95   :  { %11 = sbr.rel (!%p9_p5) target bundleno = 2 (0x2), region = 58 }

// kernel: conv_bn_relu.2
= control target key start
LH: loop header
LB: loop body
LE: loop exit
PB: predicated region body
PF: predicated region fallthrough
CT: control target
= control target key end

     0   :  { %s763_s12 = smov 0   ;;  %s838_s0 = inlined_call_operand.vmem [shape: f32[2,4,256], index: 0, kind: input, shape index: {}]   ;;  %s839_s1 = inlined_call_operand.vmem [shape: f32[8,36], index: 1, kind: input, shape index: {}]   ;;  %s840_s2 = inlined_call_operand.vmem [shape: f32[2,8,256], index: 2, kind: output, shape index: {0}]   ;;  %s841_s3 = inlined_call_operand.vmem [shape: f32[2,8,2], index: 3, kind: output, shape index: {1}]  }
   0x1 LB: > { %s660_s13 = sadd.s32 4294967295, %s724_s12   ;;  %p664_p0 = scmp.ge.s32.totalorder %s724_s12, 1  ;;  %s724_s12 = sphi %s763_s12, %s14_s12  }
   0x2   : > { %p140_p1 = scmp.lt.s32.totalorder %s724_s12, 3 }
   0x4   : > { %p141_p2 = pnand %p664_p0, %p140_p1 }
   0x5   : > { %p168_p3 = scmp.lt.s32.totalorder (!%p141_p2), %s660_s13, 1  ;;  %v200_v0 = vlaneseq (!%p141_p2)  ;;  %vm182_vm0 = vcmask (!%p141_p2), 257024   ;;  %vm184_vm1 = vcmask (!%p141_p2), 519424   ;;  %v726_v1 = vmov (!%p141_p2), 0.0   ;;  %s727_s18 = smov (!%p141_p2), 32  }
   0x6   : > { %144 = sbr.rel (%p141_p2) target bundleno = 680 (0x2a8), region = 28  ;;  %183 = vst.msk [vmem:[#allocation2] sm:$0xf] (!%p141_p2), %vm182_vm0, %v726_v1  ;;  %551 = vmatprep.mubr.f32.mxu0 (!%p141_p2), %v726_v1  ;;  %s728_s19 = smov (!%p141_p2), 17   ;;  %vm195_vm6 = vcmask (!%p141_p2), 1043712   ;;  %vm196_vm7 = vcmask (!%p141_p2), 1047556  }
   0x7   : > { %185 = vst.msk [vmem:[#allocation2 + $0x8] sm:$0xf] (!%p141_p2), %vm184_vm1, %v726_v1  ;;  %v201_v2 = vand.u32 (!%p141_p2), 127, %v200_v0  ;;  %s729_s20 = smov (!%p141_p2), 15   ;;  %s730_s21 = smov (!%p141_p2), 31   ;;  %vm191_vm8 = vcmask (!%p141_p2), 261120   ;;  %vm197_vm9 = vmor (!%p141_p2), %vm196_vm7, %vm195_vm6 }
   0x8   : > { %s731_s22 = smov (!%p141_p2), 47   ;;  %s732_s23 = smov (!%p141_p2), 33   ;;  %vm324_vm10 = vcmask (!%p141_p2), 252928   ;;  %vm248_vm11 = vcmask (!%p141_p2), 121856   ;;  %vm297_vm12 = vcmask (!%p141_p2), 138240   ;;  %vm370_vm13 = vcmask (!%p141_p2), 269312  }
   0x9   : > { %v202_v3 = vadd.s32 (!%p141_p2), 128, %v201_v2  ;;  %v207_v4 = vand.u32 (!%p141_p2), 15, %v201_v2  ;;  %s733_s24 = smov (!%p141_p2), 49   ;;  %s734_s25 = smov (!%p141_p2), 112   ;;  %vm398_vm14 = vcmask (!%p141_p2), 384000   ;;  %vm444_vm15 = vcmask (!%p141_p2), 400384  }
   0xa   : > { %s735_s26 = smov (!%p141_p2), 96   ;;  %s736_s27 = smov (!%p141_p2), 80   ;;  %vm432_vm1 = vcmask (!%p141_p2), 654336   ;;  %vm312_vm6 = vcmask (!%p141_p2), 908288   ;;  %vm413_vm7 = vcmask (!%p141_p2), 662528  }
   0xb   : > { %v214_v6 = vand.u32 (!%p141_p2), 15, %v202_v3  ;;  %vm233_vm2 = vcmp.ne.s32.totalorder (!%p141_p2), %v207_v4, 15  ;;  %vm227_vm3 = vcmp.ne.s32.totalorder (!%p141_p2), %v207_v4, 0  ;;  %s737_s28 = smov (!%p141_p2), 113   ;;  %s738_s29 = smov (!%p141_p2), 97  }
   0xc   : > { %v672_v7 = vsel (!%p141_p2), %vm233_vm2, 1.0, %v726_v1  ;;  %v670_v8 = vsel (!%p141_p2), %vm227_vm3, 1.0, %v726_v1  ;;  %s739_s30 = smov (!%p141_p2), 111   ;;  %s740_s4 = smov (!%p141_p2), 81   ;;  %vm358_vm2 = vcmask (!%p141_p2), 785408   ;;  %vm340_vm3 = vcmask (!%p141_p2), 793600  }
   0xd   : > { %s843_s13 = smov (!%p168_p3, %s660_s13), 1  ;;  %vm234_vm4 = vcmp.ne.s32.totalorder %v214_v6, 15  ;;  %vm228_vm5 = vcmp.ne.s32.totalorder %v214_v6, 0  ;;  %s741_s5 = smov 95  }
   0xe   : > { %s679_s14 = sshll.u32 %s843_s13, 3  ;;  %v673_v9 = vsel %vm234_vm4, 1.0, %v726_v1  ;;  %v671_v10 = vsel %vm228_vm5, 1.0, %v726_v1  ;;  %s742_s6 = smov 79   ;;  %vm386_vm4 = vcmask 777216   ;;  %vm263_vm5 = vcmask 924672  }
   0xf   : > { %s172_s17 = scalar_lea.vmem %s838_s0, %s679_s14  ;;  %v293_v11 = vcombine.low %v672_v7, %v673_v9  ;;  %v244_v12 = vcombine.low %v670_v8, %v671_v10  ;;  %s680_s9 = sshll.u32 %s843_s13, 4 }
  0x10   : > { %v186_v5 = vld [vmem:[%s172_s17] sm:$0xff]  ;;  %s177_s15 = scalar_lea.vmem %s840_s2, %s680_s9 }
  0x11   : > { %188 = vrot.lane.b32.xlu0 %v186_v5, %s727_s18  ;;  %294 = vrot.lane.b32.xlu1 %v293_v11, %s728_s19  ;;  %s181_s18 = scalar_lea.vmem %s841_s3, %s679_s14 }
  0x15   : > { %245 = vrot.lane.b32.xlu0 %v244_v12, %s729_s20  ;;  %321 = vrot.lane.b32.xlu1 %v244_v12, %s730_s21 }
  0x19   : > { %395 = vrot.lane.b32.xlu0 %v244_v12, %s731_s22  ;;  %367 = vrot.lane.b32.xlu1 %v293_v11, %s732_s23 }
  0x1d   : > { %441 = vrot.lane.b32.xlu0 %v293_v11, %s733_s24 }
  0x83   : > { %v189_v13 = vpop.permute.xlu0 %188  ;;  %v295_v16 = vpop.permute.xlu1 %294 }
  0x84   : > { %v190_v14 = vrot.slane %v189_v13, 4  ;;  %v296_v25 = vrot.slane %v295_v16, 4 }
  0x86   : > { %v192_v15 = vsel %vm191_vm8, %v190_v14, %v189_v13  ;;  %199 = vst.msk [vmem:[#allocation2 + $0x8] sm:$0xf] %vm182_vm0, %v190_v14  ;;  %v298_v36 = vsel %vm297_vm12, %v296_v25, %v295_v16  ;;  %vm282_vm0 = vcmask 916480   ;;  %vm459_vm8 = vcmask 646144  }
  0x87   : > { %198 = vst.msk [vmem:[#allocation2] sm:$0xff] %vm197_vm9, %v192_v15  ;;  %v246_v17 = vpop.permute.xlu0 %245  ;;  %v322_v21 = vpop.permute.xlu1 %321  ;;  %vm480_vm9 = vcmask 1043456   ;;  %vm572_vm12 = vcmask 15368  }
  0x88   : > { %v247_v19 = vrot.slane %v246_v17, 4  ;;  %v323_v24 = vrot.slane %v322_v21, 4 }
  0x8a   : > { %v325_v26 = vsel %vm324_vm10, %v323_v24, %v322_v21  ;;  %v249_v32 = vsel %vm248_vm11, %v247_v19, %v246_v17  ;;  %vm476_vm10 = vcmask 293888   ;;  %vm570_vm11 = vcmask 7168  }
  0x8b   : > { %v396_v29 = vpop.permute.xlu0 %395  ;;  %v368_v38 = vpop.permute.xlu1 %367 }
  0x8c   : > { %v397_v33 = vrot.slane %v396_v29, 4  ;;  %v369_v40 = vrot.slane %v368_v38, 4 }
  0x8d   : > { %v241_v20 = vld [vmem:[#allocation2 + $0x8] sm:$0xf] }
  0x8e   : > { %v781_v18 = vld [vmem:[#allocation2] sm:$0xff]  ;;  %v348_v22 = vld [vmem:[#allocation2 + $0x8] sm:$0xf]  ;;  %v253_v23 = vmul.f32 %v247_v19, %v241_v20  ;;  %v371_v46 = vsel %vm370_vm13, %v369_v40, %v368_v38  ;;  %v399_v49 = vsel %vm398_vm14, %v397_v33, %v396_v29 }
  0x8f   : > { %278 = vrot.lane.b32.xlu1 %v781_v18, %s734_s25  ;;  %356 = vrot.lane.b32.xlu0 %v348_v22, %s735_s26  ;;  %v715_v27 = vld [vmem:[#allocation2 + $0x8] ss:$0 sps:$4 sm:$0xff]   ;;  %v328_v30 = vmul.f32 %v325_v26, %v781_v18  ;;  %v252_v35 = vmul.f32 %v781_v18, %v249_v32  ;;  %v301_v39 = vmul.f32 %v298_v36, %v781_v18  ;;  %v442_v54 = vpop.permute.xlu0 %441 }
  0x90   : > { %v290_v28 = vld [vmem:[#allocation2 + $0x8] sm:$0xf]  ;;  %v351_v43 = vcombine.high %v781_v18, %v781_v18  ;;  %v274_v45 = vcombine.low %v781_v18, %v781_v18  ;;  %v374_v48 = vmul.f32 %v371_v46, %v781_v18  ;;  %v402_v52 = vmul.f32 %v399_v49, %v781_v18 }
  0x91   : > { %v302_v31 = vmul.f32 %v296_v25, %v290_v28  ;;  %v394_v34 = vld [vmem:[#allocation2 + $0x8] sm:$0xf]  ;;  %v256_v55 = vcombine.high %v252_v35, %v252_v35  ;;  %v443_v56 = vrot.slane %v442_v54, 4  ;;  %v332_v57 = vcombine.low %v328_v30, %v328_v30 }
  0x92   : > { %v403_v37 = vmul.f32 %v397_v33, %v394_v34  ;;  %v717_v41 = vld [vmem:[#allocation2 + $0x8] ss:$0 sps:$4 sm:$0xff]   ;;  %v305_v58 = vcombine.high %v301_v39, %v301_v39  ;;  %v378_v60 = vcombine.low %v374_v48, %v374_v48  ;;  %v406_v62 = vcombine.high %v402_v52, %v402_v52 }
  0x93   : > { %428 = vrot.lane.b32.xlu1 %v781_v18, %s736_s27  ;;  %261 = vrot.lane.b32.xlu0 %v253_v23, %s737_s28  ;;  %v320_v42 = vld [vmem:[#allocation2 + $0x8] sm:$0xf]  ;;  %v445_v59 = vsel %vm444_vm15, %v443_v56, %v442_v54 }
  0x94   : > { %v329_v44 = vmul.f32 %v323_v24, %v320_v42  ;;  %v366_v47 = vld [vmem:[#allocation2 + $0x8] sm:$0xf]  ;;  %v448_v61 = vmul.f32 %v445_v59, %v781_v18 }
  0x95   : > { %v375_v50 = vmul.f32 %v369_v40, %v366_v47  ;;  %v440_v63 = vld [vmem:[#allocation2 + $0x8] sm:$0xf] }
  0x96   : > { %v333_v51 = vcombine.low %v329_v44, %v329_v44  ;;  %v452_v0 = vcombine.high %v448_v61, %v448_v61  ;;  %v449_v1 = vmul.f32 %v443_v56, %v440_v63 }
  0x97   : > { %352 = vrot.lane.b32.xlu1 %v781_v18, %s735_s26  ;;  %280 = vrot.lane.b32.xlu0 %v715_v27, %s734_s25  ;;  %v379_v53 = vcombine.low %v375_v50, %v375_v50 }
  0x9b   : > { %336 = vrot.lane.b32.xlu1 %v328_v30, %s738_s29  ;;  %310 = vrot.lane.b32.xlu0 %v302_v31, %s739_s30 }
  0x9f   : > { %257 = vrot.lane.b32.xlu1 %v252_v35, %s737_s28  ;;  %411 = vrot.lane.b32.xlu0 %v403_v37, %s740_s4 }
  0xa3   : > { %306 = vrot.lane.b32.xlu1 %v301_v39, %s739_s30  ;;  %430 = vrot.lane.b32.xlu0 %v717_v41, %s736_s27 }
  0xa7   : > { %354 = vrot.lane.b32.xlu1 %v351_v43, %s735_s26  ;;  %276 = vrot.lane.b32.xlu0 %v274_v45, %s734_s25 }
  0xab   : > { %382 = vrot.lane.b32.xlu1 %v374_v48, %s741_s5  ;;  %338 = vrot.lane.b32.xlu0 %v333_v51, %s738_s29 }
  0xaf   : > { %407 = vrot.lane.b32.xlu1 %v402_v52, %s740_s4  ;;  %384 = vrot.lane.b32.xlu0 %v379_v53, %s741_s5 }
  0xb3   : > { %259 = vrot.lane.b32.xlu1 %v256_v55, %s737_s28  ;;  %334 = vrot.lane.b32.xlu0 %v332_v57, %s738_s29 }
  0xb7   : > { %308 = vrot.lane.b32.xlu1 %v305_v58, %s739_s30  ;;  %380 = vrot.lane.b32.xlu0 %v378_v60, %s741_s5  ;;  %v239_v60 = vld [vmem:[%s839_s1] sm:$0xff] }
  0xbb   : > { %409 = vrot.lane.b32.xlu1 %v406_v62, %s740_s4  ;;  %426 = vrot.lane.b32.xlu0 %v274_v45, %s736_s27 }
  0xbf   : > { %455 = vrot.lane.b32.xlu1 %v452_v0, %s742_s6  ;;  %457 = vrot.lane.b32.xlu0 %v449_v1, %s742_s6 }
  0xc3   : > { %453 = vrot.lane.b32.xlu1 %v448_v61, %s742_s6 }
 0x101   : > { %v279_v2 = vpop.permute.xlu1 %278  ;;  %v357_v3 = vpop.permute.xlu0 %356 }
 0x105   : > { %v429_v4 = vpop.permute.xlu1 %428  ;;  %v262_v5 = vpop.permute.xlu0 %261 }
 0x109   : > { %v353_v6 = vpop.permute.xlu1 %352  ;;  %v281_v7 = vpop.permute.xlu0 %280 }
 0x10a   : > { %v284_v8 = vsel %vm282_vm0, %v279_v2, %v281_v7 }
 0x10b   : > { %288 = vst [vmem:[#allocation3 + $0x8] sm:$0xf0] %v284_v8 }
 0x10d   : > { %v337_v9 = vpop.permute.xlu1 %336  ;;  %v311_v10 = vpop.permute.xlu0 %310 }
 0x111   : > { %v258_v11 = vpop.permute.xlu1 %257  ;;  %v412_v12 = vpop.permute.xlu0 %411 }
 0x115   : > { %v307_v13 = vpop.permute.xlu1 %306  ;;  %v431_v14 = vpop.permute.xlu0 %430 }
 0x116   : > { %v434_v15 = vsel %vm432_vm1, %v429_v4, %v431_v14 }
 0x117   : > { %438 = vst [vmem:[#allocation3 + $0x38] sm:$0xf0] %v434_v15 }
 0x119   : > { %v355_v16 = vpop.permute.xlu1 %354  ;;  %v277_v17 = vpop.permute.xlu0 %276 }
 0x11a   : > { %v359_v18 = vsel %vm358_vm2, %v353_v6, %v355_v16  ;;  %v360_v19 = vsel %vm358_vm2, %v355_v16, %v357_v3  ;;  %v283_v20 = vsel %vm282_vm0, %v277_v17, %v279_v2 }
 0x11b   : > { %363 = vst [vmem:[#allocation3 + $0x20] sm:$0xf] %v359_v18  ;;  %364 = vst [vmem:[#allocation3 + $0x28] sm:$0xf] %v360_v19 }
 0x11c   : > { %287 = vst [vmem:[#allocation3] sm:$0xf0] %v283_v20 }
 0x11d   : > { %v383_v21 = vpop.permute.xlu1 %382  ;;  %v339_v22 = vpop.permute.xlu0 %338 }
 0x11e   : > { %v342_v23 = vsel %vm340_vm3, %v337_v9, %v339_v22 }
 0x11f   : > { %346 = vst [vmem:[#allocation3 + $0x18] sm:$0xf0] %v342_v23 }
 0x121   : > { %v408_v24 = vpop.permute.xlu1 %407  ;;  %v385_v25 = vpop.permute.xlu0 %384 }
 0x122   : > { %v388_v26 = vsel %vm386_vm4, %v383_v21, %v385_v25 }
 0x123   : > { %392 = vst [vmem:[#allocation3 + $0x28] sm:$0xf0] %v388_v26 }
 0x125   : > { %v260_v27 = vpop.permute.xlu1 %259  ;;  %v335_v28 = vpop.permute.xlu0 %334 }
 0x126   : > { %v264_v29 = vsel %vm263_vm5, %v258_v11, %v260_v27  ;;  %v265_v30 = vsel %vm263_vm5, %v260_v27, %v262_v5  ;;  %v341_v31 = vsel %vm340_vm3, %v335_v28, %v337_v9 }
 0x127   : > { %268 = vst [vmem:[#allocation3] sm:$0xf] %v264_v29  ;;  %269 = vst [vmem:[#allocation3 + $0x8] sm:$0xf] %v265_v30 }
 0x128   : > { %345 = vst [vmem:[#allocation3 + $0x10] sm:$0xf0] %v341_v31 }
 0x129   : > { %v309_v32 = vpop.permute.xlu1 %308  ;;  %v381_v33 = vpop.permute.xlu0 %380 }
 0x12a   : > { %v313_v34 = vsel %vm312_vm6, %v307_v13, %v309_v32  ;;  %v314_v35 = vsel %vm312_vm6, %v309_v32, %v311_v10  ;;  %v387_v36 = vsel %vm386_vm4, %v381_v33, %v383_v21  ;;  %v471_v53 = vld [vmem:[#allocation3 + $0x28] sm:$0xff] }
 0x12b   : > { %317 = vst [vmem:[#allocation3 + $0x10] sm:$0xf] %v313_v34  ;;  %318 = vst [vmem:[#allocation3 + $0x18] sm:$0xf] %v314_v35 }
 0x12c   : > { %391 = vst [vmem:[#allocation3 + $0x20] sm:$0xf0] %v387_v36 }
 0x12d   : > { %v410_v37 = vpop.permute.xlu1 %409  ;;  %v427_v38 = vpop.permute.xlu0 %426 }
 0x12e   : > { %v414_v39 = vsel %vm413_vm7, %v408_v24, %v410_v37  ;;  %v415_v40 = vsel %vm413_vm7, %v410_v37, %v412_v12  ;;  %v433_v41 = vsel %vm432_vm1, %v427_v38, %v429_v4  ;;  %v467_v43 = vld [vmem:[#allocation3 + $0x8] sm:$0xff]  ;;  %v466_v46 = vld [vmem:[#allocation3] sm:$0xff] }
 0x12f   : > { %418 = vst [vmem:[#allocation3 + $0x30] sm:$0xf] %v414_v39  ;;  %419 = vst [vmem:[#allocation3 + $0x38] sm:$0xf] %v415_v40 }
 0x130   : > { %437 = vst [vmem:[#allocation3 + $0x30] sm:$0xf0] %v433_v41 }
 0x131   : > { %v456_v42 = vpop.permute.xlu1 %455  ;;  %v458_v44 = vpop.permute.xlu0 %457 }
 0x132   : > { %v469_v45 = vld [vmem:[#allocation3 + $0x18] sm:$0xff]  ;;  %v468_v47 = vld [vmem:[#allocation3 + $0x10] sm:$0xff]  ;;  %v461_v48 = vsel %vm459_vm8, %v456_v42, %v458_v44 }
 0x133   : > { %v681_v49 = vpack.c.bf16 %v469_v45, %v467_v43  ;;  %v683_v50 = vpack.c.bf16 %v468_v47, %v466_v46  ;;  %465 = vst [vmem:[#allocation3 + $0x48] sm:$0xf] %v461_v48  ;;  %v470_v56 = vld [vmem:[#allocation3 + $0x20] sm:$0xff] }
 0x135   : > { %v454_v51 = vpop.permute.xlu1 %453  ;;  %682 = vmatprep.subr.bf16.mxu0 %v681_v49 }
 0x136   : > { %v460_v52 = vsel %vm459_vm8, %v454_v51, %v456_v42  ;;  %684 = vmatpush1.bf16.msra.mxu0 %v683_v50  ;;  %v473_v54 = vld [vmem:[#allocation3 + $0x38] sm:$0xff] }
 0x137   : > { %464 = vst [vmem:[#allocation3 + $0x40] sm:$0xf] %v460_v52  ;;  %v685_v55 = vpack.c.bf16 %v473_v54, %v471_v53  ;;  %v472_v57 = vld [vmem:[#allocation3 + $0x30] sm:$0xff] }
 0x138   : > { %v687_v58 = vpack.c.bf16 %v472_v57, %v470_v56 }
 0x139   : > { %686 = vmatprep.subr.bf16.mxu0 %v685_v55 }
 0x13a   : > { %688 = vmatpush1.bf16.msra.mxu0 %v687_v58  ;;  %v475_v59 = vld [vmem:[#allocation3 + $0x48] sm:$0xf] }
 0x13b   : > { %674 = vmatprep.subr.msk.mxu0 %vm480_vm9, %v475_v59 }
 0x13e   : > { %v474_v61 = vld [vmem:[#allocation3 + $0x40] sm:$0xf] }
 0x13f   : > { %675 = vmatpush1.msk.msra.mxu0 %vm480_vm9, %v474_v61 }
 0x140   : > { %676 = vmatmul.mubr.msk.f32.vlgmr.msra.gmra.mrb[0].mxu0 %vm476_vm10, %v239_v60 }
 0x213   : > { %v553_v62 = vpop.f32.mrb[0].mxu0 }
 0x214   : > { %v555_v63 = vpop.f32.mrb[1].mxu0  ;;  %558 = vst [vmem:[%s177_s15] sm:$0xff] %v553_v62  ;;  %v564_v0 = vmul.f32 %v553_v62, %v553_v62 }
 0x215   : > { %559 = vst [vmem:[%s177_s15 + $0x8] sm:$0xff] %v555_v63  ;;  %v565_v1 = vmul.f32 %v555_v63, %v555_v63  ;;  %v560_v2 = vadd.f32 %v555_v63, %v553_v62 }
 0x217   : > { %561 = vadd.xlane.f32.xlu0 %v560_v2  ;;  %v566_v3 = vadd.f32 %v565_v1, %v564_v0 }
 0x219   : > { %567 = vadd.xlane.f32.xlu1 %v566_v3 }
 0x2a4   : > { %v562_v4 = vpop.xlane.xlu0 %561 }
 0x2a5   : > { %571 = vst.msk [vmem:[%s181_s18] sm:$0xff] %vm570_vm11, %v562_v4 }
 0x2a6   : > { %v568_v5 = vpop.xlane.xlu1 %567 }
 0x2a7   : > { %573 = vst.msk [vmem:[%s181_s18] sm:$0xff] %vm572_vm12, %v568_v5 }
 0x2a8 PF: > { %s14_s12 = sadd.s32 1, %s724_s12  }
 0x2a9   : > { %p11_p4 = scmp.ge.s32.totalorder %s14_s12, 4  }
 0x2ab   :  { %13 = sbr.rel (!%p11_p4) target bundleno = 1 (0x1), region = 70 }

</bundles_post_ra>
